<compile_context>
chip_gen: v6e
topology: v6e:2x2x1
jax: 0.10.0
libtpu: 0.0.40
codegen_flags: <defaults>
</compile_context>

<pallas_src>
import jax
import jax.numpy as jnp
from jax import lax
from jax.experimental import pallas as pl
from jax.experimental.pallas import tpu as pltpu


def _rnn_kernel(x_ref, wih_ref, whh_ref, b_ref, wfc_ref, bfc_ref, out_ref, xw_ref):
    S, Bc, Ep = x_ref.shape
    Hp = whh_ref.shape[0]

    # (1) Hoisted input projection + fused bias: one big bf16 MXU matmul off the
    #     latency-critical recurrent chain, spilled to VMEM scratch so it does
    #     not blow up vreg live ranges when Bc is large.
    x_all = x_ref[...].reshape(S * Bc, Ep)                                # bf16 (S*Bc, Ep)
    xw_ref[...] = (
        jnp.dot(x_all, wih_ref[...], preferred_element_type=jnp.float32)
        + b_ref[...]
    )                                                                     # f32 (S*Bc, Hp)

    whh = whh_ref[...]                                                    # bf16, resident

    # (2) Serial recurrence: only h@W_hh -> add -> tanh stays on the dependent
    #     chain.  Unrolled fori_loop keeps code visible to the LLO scheduler
    #     while bounding live ranges (one xw tile at a time from VMEM).
    def step(t, h):
        start = pl.multiple_of(t * Bc, Bc)                                # Bc is a multiple of 8
        xw_t = xw_ref[pl.ds(start, Bc), :]                                # f32 (Bc, Hp)
        hw = jnp.dot(h.astype(jnp.bfloat16), whh,
                     preferred_element_type=jnp.float32)
        return jnp.tanh(xw_t + hw)

    h0 = jnp.zeros((Bc, Hp), jnp.float32)
    h = lax.fori_loop(0, S, step, h0, unroll=True)

    # (3) Final FC on the last hidden state; lane-dense (Bc, Op) store.
    out_ref[...] = (
        jnp.dot(h.astype(jnp.bfloat16), wfc_ref[...],
                preferred_element_type=jnp.float32)
        + bfc_ref[...]
    ).astype(out_ref.dtype)


def _round_up(x, m):
    return ((x + m - 1) // m) * m


def _num_tensorcores():
    # v7x has 2 TensorCores per chip; v5e/v6e have 1.
    try:
        kind = jax.devices()[0].device_kind.lower()
        if "v7" in kind:
            return 2
    except Exception:
        pass
    return 1


def _choose_batch_chunk(B, S, Ep, Hp, Op, *, max_chunk_rows=256,
                        vmem_budget=40 * 1024 * 1024):
    """Pick Bc (multiple of 8): maximal single chunk on 1-TC parts, >=2 chunks
    on v7x, and always within a conservative VMEM budget."""
    Bp8 = _round_up(max(B, 1), 8)
    ntc = _num_tensorcores()
    if ntc > 1 and Bp8 >= 8 * ntc:
        Bc = _round_up(-(-Bp8 // ntc), 8)        # shard across both TCs on v7x
    else:
        Bc = Bp8                                  # one maximal chunk on v5e/v6e
    Bc = min(Bc, max_chunk_rows)

    # VMEM per chunk: bf16 input block (x2 buffers) + f32 xw scratch
    # + f32 out block (x2 buffers) + (double-buffered) bf16 weights / f32 biases.
    weight_bytes = 2 * 2 * (Ep * Hp + Hp * Hp + Hp * Op) + 2 * 4 * (Hp + Op)
    per_row = 2 * S * Ep * 2 + S * Hp * 4 + 2 * Op * 4 + Hp * 4
    rows_fit = max((vmem_budget - weight_bytes) // max(per_row, 1), 8)
    Bc = min(Bc, (rows_fit // 8) * 8)
    return max(Bc, 8), weight_bytes


def simple_rnn_forward(text, params):
    """text: (S, B) int32 token ids. Returns (B, out_d) float32."""
    emb_table = params["embedding"]          # (vocab, E) f32
    w_ih = params["w_ih"]                    # (E, H)
    w_hh = params["w_hh"]                    # (H, H)
    b = params["b"]                          # (1, H)  == b_ih + b_hh
    w_fc = params["w_fc"]                    # (H, O)
    b_fc = params["b_fc"]                    # (1, O)

    S, B = text.shape
    E, H = w_ih.shape
    O = w_fc.shape[1]

    # vreg-friendly padding: batch -> sublanes (8), feature dims -> lanes (128).
    Ep = _round_up(E, 128)
    Hp = _round_up(H, 128)
    Op = _round_up(O, 128)
    Bc, weight_bytes = _choose_batch_chunk(B, S, Ep, Hp, Op)
    Bp = _round_up(B, Bc)
    num_chunks = Bp // Bc

    # Pad the (cheap, one-time) token ids and embedding table instead of the
    # large (S, Bp, Ep) activation -> no extra HBM round trip of the gather
    # result.  Token id 0 is always valid; padded rows are sliced off at the end.
    text_p = jnp.pad(text, ((0, 0), (0, Bp - B)))
    emb_p = jnp.pad(emb_table, ((0, 0), (0, Ep - E))).astype(jnp.bfloat16)
    x = jnp.take(emb_p, text_p, axis=0)                                   # (S, Bp, Ep) bf16

    # Zero padding is exact: padded lanes of xW, h and the FC output stay 0.
    w_ih_p = jnp.pad(w_ih, ((0, Ep - E), (0, Hp - H))).astype(jnp.bfloat16)
    w_hh_p = jnp.pad(w_hh, ((0, Hp - H), (0, Hp - H))).astype(jnp.bfloat16)
    b_p = jnp.pad(b, ((0, 0), (0, Hp - H))).astype(jnp.float32)
    w_fc_p = jnp.pad(w_fc, ((0, Hp - H), (0, Op - O))).astype(jnp.bfloat16)
    b_fc_p = jnp.pad(b_fc, ((0, 0), (0, Op - O))).astype(jnp.float32)

    # Explicit VMEM sizing (v5e scoped default is only 16 MiB; v7x physical 64).
    est_bytes = (2 * S * Bc * Ep * 2          # input block, double-buffered
                 + S * Bc * Hp * 4            # xw scratch
                 + 2 * Bc * Op * 4            # out block, double-buffered
                 + weight_bytes)
    vmem_limit = int(min(max(est_bytes * 3 // 2, 32 * 1024 * 1024),
                         60 * 1024 * 1024))

    cost = pl.CostEstimate(
        flops=2 * S * Bp * Ep * Hp + 2 * S * Bp * Hp * Hp + 2 * Bp * Hp * Op,
        transcendentals=S * Bp * Hp,
        bytes_accessed=(S * Bp * Ep * 2
                        + (Ep * Hp + Hp * Hp + Hp * Op) * 2
                        + (Hp + Op) * 4
                        + Bp * Op * 4),
    )

    grid_spec = pltpu.PrefetchScalarGridSpec(
        num_scalar_prefetch=0,
        grid=(num_chunks,),                                      # independent batch chunks
        in_specs=[
            pl.BlockSpec((S, Bc, Ep), lambda i: (0, i, 0)),      # full sequence, one chunk
            pl.BlockSpec((Ep, Hp), lambda i: (0, 0)),            # W_ih (constant)
            pl.BlockSpec((Hp, Hp), lambda i: (0, 0)),            # W_hh (constant)
            pl.BlockSpec((1, Hp), lambda i: (0, 0)),             # b
            pl.BlockSpec((Hp, Op), lambda i: (0, 0)),            # W_fc (constant)
            pl.BlockSpec((1, Op), lambda i: (0, 0)),             # b_fc
        ],
        out_specs=pl.BlockSpec((Bc, Op), lambda i: (i, 0)),
        scratch_shapes=[pltpu.VMEM((S * Bc, Hp), jnp.float32)],  # hoisted xw
    )

    out_p = pl.pallas_call(
        _rnn_kernel,
        out_shape=jax.ShapeDtypeStruct((Bp, Op), jnp.float32),
        grid_spec=grid_spec,
        compiler_params=pltpu.CompilerParams(
            # Batch chunks are independent (h lives inside the kernel body),
            # so this axis is safely parallel -> v7x splits it over its 2 TCs.
            dimension_semantics=("parallel",),
            vmem_limit_bytes=vmem_limit,
        ),
        cost_estimate=cost,
    )(x, w_ih_p, w_hh_p, b_p, w_fc_p, b_fc_p)

    return out_p[:B, :O]


def simple_rnn_reference(text, params):
    """Pure-JAX f32 reference matching PyTorch nn.Embedding + nn.RNN + nn.Linear."""
    emb = jnp.take(params["embedding"], text, axis=0)   # (S, B, E)
    B = text.shape[1]
    H = params["w_hh"].shape[0]

    def step(h, x_t):
        h_new = jnp.tanh(x_t @ params["w_ih"] + h @ params["w_hh"] + params["b"])
        return h_new, None

    h0 = jnp.zeros((B, H), jnp.float32)
    h_last, _ = jax.lax.scan(step, h0, emb)
    return h_last @ params["w_fc"] + params["b_fc"]


def init_params(key, input_d, embed_d, hidden_d, out_d):
    ks = jax.random.split(key, 7)
    scale = 0.1
    emb = jax.random.normal(ks[0], (input_d, embed_d), jnp.float32)
    w_ih = jax.random.normal(ks[1], (hidden_d, embed_d), jnp.float32) * scale
    w_hh = jax.random.normal(ks[2], (hidden_d, hidden_d), jnp.float32) * scale
    b_ih = jax.random.normal(ks[3], (hidden_d,), jnp.float32) * scale
    b_hh = jax.random.normal(ks[4], (hidden_d,), jnp.float32) * scale
    w_fc = jax.random.normal(ks[5], (out_d, hidden_d), jnp.float32) * scale
    b_fc = jax.random.normal(ks[6], (out_d,), jnp.float32) * scale
    return {
        "embedding": emb,
        "w_ih": w_ih.T,                        # (E, H)
        "w_hh": w_hh.T,                        # (H, H)
        "b": (b_ih + b_hh).reshape(1, -1),     # (1, H)
        "w_fc": w_fc.T,                        # (H, O)
        "b_fc": b_fc.reshape(1, -1),           # (1, O)
    }


if __name__ == "__main__":
    key = jax.random.PRNGKey(0)
    input_d, embed_d, hidden_d, out_d = 16, 32, 32, 8
    seq_len, batch = 8, 4

    pkey, tkey = jax.random.split(key)
    params = init_params(pkey, input_d, embed_d, hidden_d, out_d)
    text = jax.random.randint(tkey, (seq_len, batch), 0, input_d, dtype=jnp.int32)

    out = simple_rnn_forward(text, params)
    out = jax.block_until_ready(out)

    ref = simple_rnn_reference(text, params)
    assert out.shape == (batch, out_d)
    # bf16 MXU feed (f32 accumulation) -> relaxed tolerance vs. the f32 reference.
    assert jnp.allclose(out, ref, atol=5e-2, rtol=5e-2), (
        f"mismatch vs reference, max abs err={jnp.max(jnp.abs(out - ref))}")

    print("KERNEL_OK")
</pallas_src>

<mosaic_0001>
module attributes {stable_mosaic.version = 11 : i64} {
  func.func @_rnn_kernel(%arg0: i32, %arg1: memref<8x8x128xbf16, #tpu.memory_space<vmem>>, %arg2: memref<128x128xbf16, #tpu.memory_space<vmem>>, %arg3: memref<128x128xbf16, #tpu.memory_space<vmem>>, %arg4: memref<1x128xf32, #tpu.memory_space<vmem>>, %arg5: memref<128x128xbf16, #tpu.memory_space<vmem>>, %arg6: memref<1x128xf32, #tpu.memory_space<vmem>>, %arg7: memref<8x128xf32, #tpu.memory_space<vmem>>, %arg8: memref<64x128xf32, #tpu.memory_space<vmem>>) attributes {dimension_semantics = [#tpu.dimension_semantics<parallel>], iteration_bounds = array<i64: 1>, scalar_prefetch = 0 : i64, scratch_operands = 1 : i64, tpu.core_type = #tpu.core_type<tc>, window_params = [{transform_indices = @transform_0, window_bounds = array<i64: 8, 8, 128>}, {pipeline_mode = #tpu.pipeline_mode<synchronous>, transform_indices = @transform_1, window_bounds = array<i64: 128, 128>}, {pipeline_mode = #tpu.pipeline_mode<synchronous>, transform_indices = @transform_2, window_bounds = array<i64: 128, 128>}, {pipeline_mode = #tpu.pipeline_mode<synchronous>, transform_indices = @transform_3, window_bounds = array<i64: 1, 128>}, {pipeline_mode = #tpu.pipeline_mode<synchronous>, transform_indices = @transform_4, window_bounds = array<i64: 128, 128>}, {pipeline_mode = #tpu.pipeline_mode<synchronous>, transform_indices = @transform_5, window_bounds = array<i64: 1, 128>}, {transform_indices = @transform_6, window_bounds = array<i64: 8, 128>}]} {
    %c0 = arith.constant 0 : index
    %c0_0 = arith.constant 0 : index
    %c0_1 = arith.constant 0 : index
    %0 = vector.load %arg1[%c0, %c0_0, %c0_1] : memref<8x8x128xbf16, #tpu.memory_space<vmem>>, vector<8x8x128xbf16>
    %1 = vector.shape_cast %0 : vector<8x8x128xbf16> to vector<64x128xbf16>
    %c0_2 = arith.constant 0 : index
    %c0_3 = arith.constant 0 : index
    %2 = vector.load %arg2[%c0_2, %c0_3] : memref<128x128xbf16, #tpu.memory_space<vmem>>, vector<128x128xbf16>
    %cst = arith.constant dense<0.000000e+00> : vector<64x128xf32>
    %3 = tpu.matmul %1, %2, %cst {dimension_numbers = #tpu.dot_dimension_numbers<[1], [0], [0], [1], [0, 0, 1, 1], [], []>} : vector<64x128xbf16>, vector<128x128xbf16>, vector<64x128xf32> -> vector<64x128xf32>
    %c0_4 = arith.constant 0 : index
    %c0_5 = arith.constant 0 : index
    %4 = vector.load %arg4[%c0_4, %c0_5] : memref<1x128xf32, #tpu.memory_space<vmem>>, vector<1x128xf32>
    %5 = vector.broadcast %4 : vector<1x128xf32> to vector<64x128xf32>
    %6 = arith.addf %3, %5 : vector<64x128xf32>
    %c0_6 = arith.constant 0 : index
    %c0_7 = arith.constant 0 : index
    %7 = vector.load %arg8[%c0_6, %c0_7] : memref<64x128xf32, #tpu.memory_space<vmem>>, vector<64x128xf32>
    tpu.vector_store %arg8[%c0_6, %c0_7], %6 {strides = array<i32>} : memref<64x128xf32, #tpu.memory_space<vmem>>, vector<64x128xf32>,
    %c0_8 = arith.constant 0 : index
    %c0_9 = arith.constant 0 : index
    %8 = vector.load %arg3[%c0_8, %c0_9] : memref<128x128xbf16, #tpu.memory_space<vmem>>, vector<128x128xbf16>
    %cst_10 = arith.constant 0.000000e+00 : f32
    %9 = vector.broadcast %cst_10 : f32 to vector<8x128xf32>
    %c0_i32 = arith.constant 0 : i32
    %c8_i32 = arith.constant 8 : i32
    %10 = arith.muli %c0_i32, %c8_i32 : i32
    %11 = tpu.assume_multiple %10, 8 : i32
    %12 = arith.index_cast %11 : i32 to index
    %c0_11 = arith.constant 0 : index
    %13 = vector.load %arg8[%12, %c0_11] : memref<64x128xf32, #tpu.memory_space<vmem>>, vector<8x128xf32>
    %14 = arith.truncf %9 : vector<8x128xf32> to vector<8x128xbf16>
    %cst_12 = arith.constant dense<0.000000e+00> : vector<8x128xf32>
    %15 = tpu.matmul %14, %8, %cst_12 {dimension_numbers = #tpu.dot_dimension_numbers<[1], [0], [0], [1], [0, 0, 1, 1], [], []>} : vector<8x128xbf16>, vector<128x128xbf16>, vector<8x128xf32> -> vector<8x128xf32>
    %16 = arith.addf %13, %15 : vector<8x128xf32>
    %17 = math.tanh %16 : vector<8x128xf32>
    %c1_i32 = arith.constant 1 : i32
    %c8_i32_13 = arith.constant 8 : i32
    %18 = arith.muli %c1_i32, %c8_i32_13 : i32
    %19 = tpu.assume_multiple %18, 8 : i32
    %20 = arith.index_cast %19 : i32 to index
    %c0_14 = arith.constant 0 : index
    %21 = vector.load %arg8[%20, %c0_14] : memref<64x128xf32, #tpu.memory_space<vmem>>, vector<8x128xf32>
    %22 = arith.truncf %17 : vector<8x128xf32> to vector<8x128xbf16>
    %cst_15 = arith.constant dense<0.000000e+00> : vector<8x128xf32>
    %23 = tpu.matmul %22, %8, %cst_15 {dimension_numbers = #tpu.dot_dimension_numbers<[1], [0], [0], [1], [0, 0, 1, 1], [], []>} : vector<8x128xbf16>, vector<128x128xbf16>, vector<8x128xf32> -> vector<8x128xf32>
    %24 = arith.addf %21, %23 : vector<8x128xf32>
    %25 = math.tanh %24 : vector<8x128xf32>
    %c2_i32 = arith.constant 2 : i32
    %c8_i32_16 = arith.constant 8 : i32
    %26 = arith.muli %c2_i32, %c8_i32_16 : i32
    %27 = tpu.assume_multiple %26, 8 : i32
    %28 = arith.index_cast %27 : i32 to index
    %c0_17 = arith.constant 0 : index
    %29 = vector.load %arg8[%28, %c0_17] : memref<64x128xf32, #tpu.memory_space<vmem>>, vector<8x128xf32>
    %30 = arith.truncf %25 : vector<8x128xf32> to vector<8x128xbf16>
    %cst_18 = arith.constant dense<0.000000e+00> : vector<8x128xf32>
    %31 = tpu.matmul %30, %8, %cst_18 {dimension_numbers = #tpu.dot_dimension_numbers<[1], [0], [0], [1], [0, 0, 1, 1], [], []>} : vector<8x128xbf16>, vector<128x128xbf16>, vector<8x128xf32> -> vector<8x128xf32>
    %32 = arith.addf %29, %31 : vector<8x128xf32>
    %33 = math.tanh %32 : vector<8x128xf32>
    %c3_i32 = arith.constant 3 : i32
    %c8_i32_19 = arith.constant 8 : i32
    %34 = arith.muli %c3_i32, %c8_i32_19 : i32
    %35 = tpu.assume_multiple %34, 8 : i32
    %36 = arith.index_cast %35 : i32 to index
    %c0_20 = arith.constant 0 : index
    %37 = vector.load %arg8[%36, %c0_20] : memref<64x128xf32, #tpu.memory_space<vmem>>, vector<8x128xf32>
    %38 = arith.truncf %33 : vector<8x128xf32> to vector<8x128xbf16>
    %cst_21 = arith.constant dense<0.000000e+00> : vector<8x128xf32>
    %39 = tpu.matmul %38, %8, %cst_21 {dimension_numbers = #tpu.dot_dimension_numbers<[1], [0], [0], [1], [0, 0, 1, 1], [], []>} : vector<8x128xbf16>, vector<128x128xbf16>, vector<8x128xf32> -> vector<8x128xf32>
    %40 = arith.addf %37, %39 : vector<8x128xf32>
    %41 = math.tanh %40 : vector<8x128xf32>
    %c4_i32 = arith.constant 4 : i32
    %c8_i32_22 = arith.constant 8 : i32
    %42 = arith.muli %c4_i32, %c8_i32_22 : i32
    %43 = tpu.assume_multiple %42, 8 : i32
    %44 = arith.index_cast %43 : i32 to index
    %c0_23 = arith.constant 0 : index
    %45 = vector.load %arg8[%44, %c0_23] : memref<64x128xf32, #tpu.memory_space<vmem>>, vector<8x128xf32>
    %46 = arith.truncf %41 : vector<8x128xf32> to vector<8x128xbf16>
    %cst_24 = arith.constant dense<0.000000e+00> : vector<8x128xf32>
    %47 = tpu.matmul %46, %8, %cst_24 {dimension_numbers = #tpu.dot_dimension_numbers<[1], [0], [0], [1], [0, 0, 1, 1], [], []>} : vector<8x128xbf16>, vector<128x128xbf16>, vector<8x128xf32> -> vector<8x128xf32>
    %48 = arith.addf %45, %47 : vector<8x128xf32>
    %49 = math.tanh %48 : vector<8x128xf32>
    %c5_i32 = arith.constant 5 : i32
    %c8_i32_25 = arith.constant 8 : i32
    %50 = arith.muli %c5_i32, %c8_i32_25 : i32
    %51 = tpu.assume_multiple %50, 8 : i32
    %52 = arith.index_cast %51 : i32 to index
    %c0_26 = arith.constant 0 : index
    %53 = vector.load %arg8[%52, %c0_26] : memref<64x128xf32, #tpu.memory_space<vmem>>, vector<8x128xf32>
    %54 = arith.truncf %49 : vector<8x128xf32> to vector<8x128xbf16>
    %cst_27 = arith.constant dense<0.000000e+00> : vector<8x128xf32>
    %55 = tpu.matmul %54, %8, %cst_27 {dimension_numbers = #tpu.dot_dimension_numbers<[1], [0], [0], [1], [0, 0, 1, 1], [], []>} : vector<8x128xbf16>, vector<128x128xbf16>, vector<8x128xf32> -> vector<8x128xf32>
    %56 = arith.addf %53, %55 : vector<8x128xf32>
    %57 = math.tanh %56 : vector<8x128xf32>
    %c6_i32 = arith.constant 6 : i32
    %c8_i32_28 = arith.constant 8 : i32
    %58 = arith.muli %c6_i32, %c8_i32_28 : i32
    %59 = tpu.assume_multiple %58, 8 : i32
    %60 = arith.index_cast %59 : i32 to index
    %c0_29 = arith.constant 0 : index
    %61 = vector.load %arg8[%60, %c0_29] : memref<64x128xf32, #tpu.memory_space<vmem>>, vector<8x128xf32>
    %62 = arith.truncf %57 : vector<8x128xf32> to vector<8x128xbf16>
    %cst_30 = arith.constant dense<0.000000e+00> : vector<8x128xf32>
    %63 = tpu.matmul %62, %8, %cst_30 {dimension_numbers = #tpu.dot_dimension_numbers<[1], [0], [0], [1], [0, 0, 1, 1], [], []>} : vector<8x128xbf16>, vector<128x128xbf16>, vector<8x128xf32> -> vector<8x128xf32>
    %64 = arith.addf %61, %63 : vector<8x128xf32>
    %65 = math.tanh %64 : vector<8x128xf32>
    %c7_i32 = arith.constant 7 : i32
    %c8_i32_31 = arith.constant 8 : i32
    %66 = arith.muli %c7_i32, %c8_i32_31 : i32
    %67 = tpu.assume_multiple %66, 8 : i32
    %68 = arith.index_cast %67 : i32 to index
    %c0_32 = arith.constant 0 : index
    %69 = vector.load %arg8[%68, %c0_32] : memref<64x128xf32, #tpu.memory_space<vmem>>, vector<8x128xf32>
    %70 = arith.truncf %65 : vector<8x128xf32> to vector<8x128xbf16>
    %cst_33 = arith.constant dense<0.000000e+00> : vector<8x128xf32>
    %71 = tpu.matmul %70, %8, %cst_33 {dimension_numbers = #tpu.dot_dimension_numbers<[1], [0], [0], [1], [0, 0, 1, 1], [], []>} : vector<8x128xbf16>, vector<128x128xbf16>, vector<8x128xf32> -> vector<8x128xf32>
    %72 = arith.addf %69, %71 : vector<8x128xf32>
    %73 = math.tanh %72 : vector<8x128xf32>
    %c8_i32_34 = arith.constant 8 : i32
    %74 = arith.truncf %73 : vector<8x128xf32> to vector<8x128xbf16>
    %c0_35 = arith.constant 0 : index
    %c0_36 = arith.constant 0 : index
    %75 = vector.load %arg5[%c0_35, %c0_36] : memref<128x128xbf16, #tpu.memory_space<vmem>>, vector<128x128xbf16>
    %cst_37 = arith.constant dense<0.000000e+00> : vector<8x128xf32>
    %76 = tpu.matmul %74, %75, %cst_37 {dimension_numbers = #tpu.dot_dimension_numbers<[1], [0], [0], [1], [0, 0, 1, 1], [], []>} : vector<8x128xbf16>, vector<128x128xbf16>, vector<8x128xf32> -> vector<8x128xf32>
    %c0_38 = arith.constant 0 : index
    %c0_39 = arith.constant 0 : index
    %77 = vector.load %arg6[%c0_38, %c0_39] : memref<1x128xf32, #tpu.memory_space<vmem>>, vector<1x128xf32>
    %78 = vector.broadcast %77 : vector<1x128xf32> to vector<8x128xf32>
    %79 = arith.addf %76, %78 : vector<8x128xf32>
    %c0_40 = arith.constant 0 : index
    %c0_41 = arith.constant 0 : index
    %80 = vector.load %arg7[%c0_40, %c0_41] : memref<8x128xf32, #tpu.memory_space<vmem>>, vector<8x128xf32>
    tpu.vector_store %arg7[%c0_40, %c0_41], %79 {strides = array<i32>} : memref<8x128xf32, #tpu.memory_space<vmem>>, vector<8x128xf32>,
    return
  }
  func.func @transform_0(%arg0: i32) -> (i32, i32, i32) {
    %c0_i32 = arith.constant 0 : i32
    %c0_i32_0 = arith.constant 0 : i32
    %c0_i32_1 = arith.constant 0 : i32
    return %c0_i32, %arg0, %c0_i32_0 : i32, i32, i32
  }
  func.func @transform_1(%arg0: i32) -> (i32, i32) {
    %c0_i32 = arith.constant 0 : i32
    %c0_i32_0 = arith.constant 0 : i32
    %c0_i32_1 = arith.constant 0 : i32
    return %c0_i32, %c0_i32_0 : i32, i32
  }
  func.func @transform_2(%arg0: i32) -> (i32, i32) {
    %c0_i32 = arith.constant 0 : i32
    %c0_i32_0 = arith.constant 0 : i32
    %c0_i32_1 = arith.constant 0 : i32
    return %c0_i32, %c0_i32_0 : i32, i32
  }
  func.func @transform_3(%arg0: i32) -> (i32, i32) {
    %c0_i32 = arith.constant 0 : i32
    %c0_i32_0 = arith.constant 0 : i32
    %c0_i32_1 = arith.constant 0 : i32
    return %c0_i32, %c0_i32_0 : i32, i32
  }
  func.func @transform_4(%arg0: i32) -> (i32, i32) {
    %c0_i32 = arith.constant 0 : i32
    %c0_i32_0 = arith.constant 0 : i32
    %c0_i32_1 = arith.constant 0 : i32
    return %c0_i32, %c0_i32_0 : i32, i32
  }
  func.func @transform_5(%arg0: i32) -> (i32, i32) {
    %c0_i32 = arith.constant 0 : i32
    %c0_i32_0 = arith.constant 0 : i32
    %c0_i32_1 = arith.constant 0 : i32
    return %c0_i32, %c0_i32_0 : i32, i32
  }
  func.func @transform_6(%arg0: i32) -> (i32, i32) {
    %c0_i32 = arith.constant 0 : i32
    %c0_i32_0 = arith.constant 0 : i32
    return %arg0, %c0_i32 : i32, i32
  }
}

</mosaic_0001>

<bundles_post_ra>
// kernel: tpu_custom_call.1
= control target key start
LH: loop header
LB: loop body
LE: loop exit
PB: predicated region body
PF: predicated region fallthrough
CT: control target
= control target key end

     0   :  { %11 = vsyncpa [#allocation4], 0  ;;  %s1567_s0 = inlined_call_operand.hbm [shape: bf16[8,8,128], index: 0, kind: input, shape index: {}]   ;;  %s1568_s1 = inlined_call_operand.hbm [shape: bf16[128,128], index: 1, kind: input, shape index: {}]   ;;  %s1569_s2 = inlined_call_operand.hbm [shape: bf16[128,128], index: 2, kind: input, shape index: {}]   ;;  %s1570_s3 = inlined_call_operand.vmem [shape: f32[1,128], index: 3, kind: input, shape index: {}]   ;;  %s1571_s4 = inlined_call_operand.hbm [shape: bf16[128,128], index: 4, kind: input, shape index: {}]   ;;  %s1572_s5 = inlined_call_operand.vmem [shape: f32[1,128], index: 5, kind: input, shape index: {}]   ;;  %s1573_s6 = inlined_call_operand.hbm [shape: f32[8,128], index: 6, kind: output, shape index: {}]  }
   0x1   :  { %12 = vsyncpa [#allocation7], 0 }
   0x2   :  { %13 = vsyncpa [#allocation10], 0 }
   0x3   :  { %14 = vsyncpa [#allocation5], 0  ;;  %s1297_s21 = smov [#allocation6]   ;;  %s1298_s23 = smov [#allocation3]  }
   0x4   :  { %s32_s22 = sshll.u32 %s1297_s21, 4  ;;  %s20_s24 = sshll.u32 %s1298_s23, 4  ;;  %s33_s22 = int_to_ptr.vmem [resolvable:$true] %s32_s22  ;;  %s21_s24 = int_to_ptr.vmem [resolvable:$true] %s20_s24 }
   0x5   :  { %s1197_s25 = scalar_lea.vmem %s33_s22, 1024  ;;  %p1202_p1 = scmp.lt.s32.totalorder %s33_s22, %s33_s22 }
   0x6   :  { %p1198_p0 = scmp.ne.s32.totalorder %s33_s22, %s1197_s25  ;;  %p1203_p2 = scmp.lt.s32.totalorder %s1197_s25, %s1197_s25 }
   0x8   :  { %p1204_p3 = por %p1203_p2, %p1202_p1 }
   0xa   :  { %p1205_p4 = pnand %p1204_p3, %p1198_p0 }
   0xc   :  { %1208 = shalt.err (!%p1205_p4)
}
   0xd   :  { %s1299_s26 = smov 64   ;;  %s1300_s27 = smov 4  }
   0xe   :  { %38 = dma.hbm_to_vmem [thread:$0]  %s1568_s1, 1024, %s33_s22, [#allocation7], %s1299_s26, %s1299_s26, %s1300_s27  }
   0xf   :  { %s1217_s30 = scalar_lea.vmem %s21_s24, 512  ;;  %p1222_p6 = scmp.lt.s32.totalorder %s21_s24, %s21_s24 }
  0x10   :  { %p1218_p5 = scmp.ne.s32.totalorder %s21_s24, %s1217_s30  ;;  %p1223_p7 = scmp.lt.s32.totalorder %s1217_s30, %s1217_s30 }
  0x12   :  { %p1224_p8 = por %p1223_p7, %p1222_p6 }
  0x14   :  { %p1225_p9 = pnand %p1224_p8, %p1218_p5 }
  0x16   :  { %1228 = shalt.err (!%p1225_p9)
}
  0x17   :  { %26 = dma.hbm_to_vmem [thread:$0]  %s1567_s0, 512, %s21_s24, [#allocation4], %s1299_s26, %s1299_s26, %s1300_s27  }
  0x18   :  { %s1301_s9 = smov [#allocation8]   ;;  %s1302_s11 = smov [#allocation9]  }
  0x19   :  { %s44_s10 = sshll.u32 %s1301_s9, 4  ;;  %s58_s12 = sshll.u32 %s1302_s11, 4  ;;  %s45_s10 = int_to_ptr.vmem [resolvable:$true] %s44_s10  ;;  %s59_s12 = int_to_ptr.vmem [resolvable:$true] %s58_s12 }
  0x1a   :  { %s1237_s1 = scalar_lea.vmem %s45_s10, 1024  ;;  %p1242_p11 = scmp.lt.s32.totalorder %s45_s10, %s45_s10 }
  0x1b   :  { %p1238_p10 = scmp.ne.s32.totalorder %s45_s10, %s1237_s1  ;;  %p1243_p12 = scmp.lt.s32.totalorder %s1237_s1, %s1237_s1 }
  0x1d   :  { %p1244_p13 = por %p1243_p12, %p1242_p11 }
  0x1f   :  { %p1245_p0 = pnand %p1244_p13, %p1238_p10 }
  0x21   :  { %1248 = shalt.err (!%p1245_p0)
}
  0x22   :  { %50 = dma.hbm_to_vmem [thread:$0]  %s1569_s2, 1024, %s45_s10, [#allocation7], %s1299_s26, %s1299_s26, %s1300_s27  }
  0x23   :  { %s1257_s0 = scalar_lea.vmem %s59_s12, 1024  ;;  %p1262_p2 = scmp.lt.s32.totalorder %s59_s12, %s59_s12 }
  0x24   :  { %p1258_p1 = scmp.ne.s32.totalorder %s59_s12, %s1257_s0  ;;  %p1263_p3 = scmp.lt.s32.totalorder %s1257_s0, %s1257_s0 }
  0x26   :  { %p1264_p4 = por %p1263_p3, %p1262_p2 }
  0x28   :  { %p1265_p5 = pnand %p1264_p4, %p1258_p1 }
  0x2a   :  { %1268 = shalt.err (!%p1265_p5)
}
  0x2b   :  { %64 = dma.hbm_to_vmem [thread:$0]  %s1571_s4, 1024, %s59_s12, [#allocation10], %s1299_s26, %s1299_s26, %s1300_s27  }
  0x2c   :  { %1289 = dma.done.wait [#allocation4], 512  }
  0x2d   :  { %1290 = vsyncadd [#allocation4], 4294966784 }
  0x2e   :  { %1291 = dma.done.wait [#allocation7], 2048  }
  0x2f   :  { %1292 = vsyncadd [#allocation7], 4294965248 }
  0x30   :  { %1293 = dma.done.wait [#allocation10], 1024  }
  0x31   :  { %1294 = vsyncadd [#allocation10], 4294966272  ;;  %v1303_v0 = vmov 0.0   ;;  %vm1304_vm0 = vmmov 0   ;;  %v1145_v1 = vld [vmem:[#allocation6 + $0x38] sm:$0xff]   ;;  %v1147_v3 = vld [vmem:[#allocation6 + $0x30] sm:$0xff]  }
  0x32   :  { %955 = vmatprep.subr.bf16.mxu1 %v1303_v0  ;;  %971 = vmatprep.mubr.msk.bf16.mxu1 %vm1304_vm0, %v1303_v0  ;;  %v1369_v2 = vld [vmem:[#allocation8 + $0x38] sm:$0xff]   ;;  %v1372_v4 = vld [vmem:[#allocation8 + $0x30] sm:$0xff]   ;;  %v1149_v5 = vld [vmem:[#allocation6 + $0x28] sm:$0xff]   ;;  %v1305_v19 = vmov 0   ;;  %s1306_s18 = smov [#allocation11]  }
  0x33   :  { %931 = vmatprep.subr.bf16.mxu0 %v1145_v1  ;;  %956 = vmatpush3.bf16.msra.mxu1 %v1369_v2  ;;  %v1376_v6 = vld [vmem:[#allocation8 + $0x28] sm:$0xff]   ;;  %v1151_v7 = vld [vmem:[#allocation6 + $0x20] sm:$0xff]   ;;  %v1153_v9 = vld [vmem:[#allocation6 + $0x18] sm:$0xff]   ;;  %s797_s19 = sshll.u32 %s1306_s18, 4  ;;  %s798_s19 = int_to_ptr.vmem [resolvable:$true] %s797_s19 }
  0x34   :  { %932 = vmatpush3.bf16.msra.mxu0 %v1145_v1  ;;  %957 = vmatprep.subr.bf16.mxu1 %v1303_v0  ;;  %v1380_v8 = vld [vmem:[#allocation8 + $0x20] sm:$0xff]   ;;  %v1383_v10 = vld [vmem:[#allocation8 + $0x18] sm:$0xff]   ;;  %v1155_v11 = vld [vmem:[#allocation6 + $0x10] sm:$0xff]   ;;  %s1269_s20 = scalar_lea.vmem %s798_s19, 128  ;;  %p1274_p7 = scmp.lt.s32.totalorder %s798_s19, %s798_s19 }
  0x35   :  { %933 = vmatprep.subr.bf16.mxu0 %v1147_v3  ;;  %v1161_v12 = vld [vmem:[#allocation3] sm:$0xff]   ;;  %v1387_v13 = vld [vmem:[#allocation8 + $0x10] sm:$0xff]   ;;  %v1157_v14 = vld [vmem:[#allocation6 + $0x8] sm:$0xff]   ;;  %p1270_p6 = scmp.ne.s32.totalorder %s798_s19, %s1269_s20  ;;  %p1275_p8 = scmp.lt.s32.totalorder %s1269_s20, %s1269_s20 }
  0x36   :  { %947 = vmatprep.mubr.bf16.mxu0 %v1161_v12  ;;  %v1391_v15 = vld [vmem:[#allocation8 + $0x8] sm:$0xff]   ;;  %v1159_v16 = vld [vmem:[#allocation6] sm:$0xff]   ;;  %v1163_v20 = vld [vmem:[#allocation3 + $0x10] sm:$0xff]  }
  0x37   :  { %958 = vmatpush3.bf16.msra.mxu1 %v1372_v4  ;;  %v1396_v17 = vld [vmem:[#allocation8] sm:$0xff]   ;;  %v1162_v18 = vld [vmem:[#allocation3 + $0x8] sm:$0xff]   ;;  %v1164_v21 = vld [vmem:[#allocation3 + $0x18] sm:$0xff]   ;;  %p1276_p9 = por %p1275_p8, %p1274_p7 }
  0x38   :  { %934 = vmatpush3.bf16.msra.mxu0 %v1147_v3  ;;  %959 = vmatprep.subr.bf16.mxu1 %v1303_v0  ;;  %v1441_v24 = vld [vmem:[%s1570_s3] ss:$0 sm:$0xff] }
  0x39   :  { %935 = vmatprep.subr.bf16.mxu0 %v1149_v5  ;;  %p1277_p10 = pnand %p1276_p9, %p1270_p6 }
  0x3b   :  { %960 = vmatpush3.bf16.msra.mxu1 %v1376_v6 }
  0x3c   :  { %936 = vmatpush3.bf16.msra.mxu0 %v1149_v5  ;;  %961 = vmatprep.subr.bf16.mxu1 %v1303_v0 }
  0x3d   :  { %937 = vmatprep.subr.bf16.mxu0 %v1151_v7 }
  0x3f   :  { %962 = vmatpush3.bf16.msra.mxu1 %v1380_v8 }
  0x40   :  { %938 = vmatpush3.bf16.msra.mxu0 %v1151_v7  ;;  %963 = vmatprep.subr.bf16.mxu1 %v1303_v0 }
  0x41   :  { %939 = vmatprep.subr.bf16.mxu0 %v1153_v9 }
  0x43   :  { %964 = vmatpush3.bf16.msra.mxu1 %v1383_v10 }
  0x44   :  { %940 = vmatpush3.bf16.msra.mxu0 %v1153_v9  ;;  %965 = vmatprep.subr.bf16.mxu1 %v1303_v0 }
  0x45   :  { %941 = vmatprep.subr.bf16.mxu0 %v1155_v11 }
  0x47   :  { %966 = vmatpush3.bf16.msra.mxu1 %v1387_v13 }
  0x48   :  { %942 = vmatpush3.bf16.msra.mxu0 %v1155_v11  ;;  %967 = vmatprep.subr.bf16.mxu1 %v1303_v0 }
  0x49   :  { %943 = vmatprep.subr.bf16.mxu0 %v1157_v14 }
  0x4b   :  { %968 = vmatpush3.bf16.msra.mxu1 %v1391_v15 }
  0x4c   :  { %944 = vmatpush3.bf16.msra.mxu0 %v1157_v14  ;;  %969 = vmatprep.subr.bf16.mxu1 %v1303_v0 }
  0x4d   :  { %945 = vmatprep.subr.bf16.mxu0 %v1159_v16 }
  0x4f   :  { %970 = vmatpush3.bf16.msra.mxu1 %v1396_v17 }
  0x50   :  { %946 = vmatpush3.bf16.msra.mxu0 %v1159_v16  ;;  %995 = vmatprep.subr.bf16.mxu1 %v1303_v0 }
  0x51   :  { %975 = vmatprep.subr.bf16.mxu0 %v1303_v0 }
  0x52   :  { %972 = vmatmul.mubr.bf16.vlgmr.msra.gmra.mxu1 %v1305_v19 }
  0x53   :  { %948 = vmatmul.mubr.bf16.vlgmr.msra.gmra.mxu0 %v1162_v18  ;;  %996 = vmatpush3.bf16.msra.mxu1 %v1369_v2 }
  0x54   :  { %976 = vmatpush3.bf16.msra.mxu0 %v1369_v2  ;;  %997 = vmatprep.subr.bf16.mxu1 %v1303_v0 }
  0x55   :  { %977 = vmatprep.subr.bf16.mxu0 %v1303_v0  ;;  %1011 = vmatprep.mubr.msk.bf16.mxu1 %vm1304_vm0, %v1303_v0 }
  0x56   :  { %951 = vmatprep.mubr.bf16.mxu0 %v1163_v20 }
  0x57   :  { %998 = vmatpush3.bf16.msra.mxu1 %v1372_v4 }
  0x58   :  { %978 = vmatpush3.bf16.msra.mxu0 %v1372_v4  ;;  %999 = vmatprep.subr.bf16.mxu1 %v1303_v0 }
  0x59   :  { %979 = vmatprep.subr.bf16.mxu0 %v1303_v0 }
  0x5b   :  { %1000 = vmatpush3.bf16.msra.mxu1 %v1376_v6  ;;  %952 = vmatmul.mubr.bf16.gmra.mxu0 %v1164_v21 }
  0x5c   :  { %980 = vmatpush3.bf16.msra.mxu0 %v1376_v6  ;;  %1001 = vmatprep.subr.bf16.mxu1 %v1303_v0 }
  0x5d   :  { %981 = vmatprep.subr.bf16.mxu0 %v1303_v0  ;;  %991 = vmatprep.mubr.msk.bf16.mxu0 %vm1304_vm0, %v1303_v0 }
  0x5f   :  { %1002 = vmatpush3.bf16.msra.mxu1 %v1380_v8 }
  0x60   :  { %982 = vmatpush3.bf16.msra.mxu0 %v1380_v8  ;;  %1003 = vmatprep.subr.bf16.mxu1 %v1303_v0 }
  0x61   :  { %983 = vmatprep.subr.bf16.mxu0 %v1303_v0 }
  0x63   :  { %1004 = vmatpush3.bf16.msra.mxu1 %v1383_v10 }
  0x64   :  { %984 = vmatpush3.bf16.msra.mxu0 %v1383_v10  ;;  %1005 = vmatprep.subr.bf16.mxu1 %v1303_v0 }
  0x65   :  { %985 = vmatprep.subr.bf16.mxu0 %v1303_v0 }
  0x67   :  { %1006 = vmatpush3.bf16.msra.mxu1 %v1387_v13 }
  0x68   :  { %986 = vmatpush3.bf16.msra.mxu0 %v1387_v13  ;;  %1007 = vmatprep.subr.bf16.mxu1 %v1303_v0 }
  0x69   :  { %987 = vmatprep.subr.bf16.mxu0 %v1303_v0 }
  0x6b   :  { %1008 = vmatpush3.bf16.msra.mxu1 %v1391_v15 }
  0x6c   :  { %988 = vmatpush3.bf16.msra.mxu0 %v1391_v15  ;;  %1009 = vmatprep.subr.bf16.mxu1 %v1303_v0 }
  0x6d   :  { %989 = vmatprep.subr.bf16.mxu0 %v1303_v0 }
  0x6f   :  { %1010 = vmatpush3.bf16.msra.mxu1 %v1396_v17 }
  0x70   :  { %990 = vmatpush3.bf16.msra.mxu0 %v1396_v17  ;;  %1035 = vmatprep.subr.bf16.mxu1 %v1303_v0 }
  0x71   :  { %1015 = vmatprep.subr.bf16.mxu0 %v1303_v0 }
 0x112   :  { %v355_v22 = vpop.f32.mrf.mxu1 }
 0x113   :  { %v949_v23 = vpop.f32.mrf.mxu0 }
 0x114   :  { %v973_v25 = vpop.f32.mrf.mxu1  ;;  %v226_v47 = vadd.f32 %v949_v23, %v1441_v24 }
 0x115   :  { %v217_v26 = vpop.f32.mrf.mxu0 }
 0x116   :  { %v218_v27 = vadd.f32 %v1441_v24, %v217_v26  ;;  %v358_v28 = vpop.f32.mrf.mxu1 }
 0x117   :  { %v950_v33 = vpop.f32.mrf.mxu0  ;;  %v1168_v28 = vld [vmem:[#allocation9 + $0x20] sm:$0xff]  }
 0x118   :  { %v361_v29 = vadd.f32 %v355_v22, %v218_v27  ;;  %v974_v30 = vpop.f32.mrf.mxu1  ;;  %v229_v55 = vadd.f32 %v950_v33, %v1441_v24 }
 0x119   :  { %v220_v34 = vpop.f32.mrf.mxu0  ;;  %v1170_v30 = vld [vmem:[#allocation9 + $0x10] sm:$0xff]  }
 0x11a   :  { %1173 = vtanh.f32 %v361_v29  ;;  %v221_v39 = vadd.f32 %v1441_v24, %v220_v34  ;;  %v1169_v29 = vld [vmem:[#allocation9 + $0x18] sm:$0xff]  }
 0x11b   :  { %v1462_v35 = vpop.f32.mrf.mxu0 }
 0x11c   :  { %v242_v19 = vadd.f32 %v1462_v35, %v1441_v24 }
 0x11d   :  { %v1464_v36 = vpop.f32.mrf.mxu0 }
 0x11e   :  { %v234_v63 = vadd.f32 %v1441_v24, %v1464_v36 }
 0x11f   :  { %v1466_v37 = vpop.f32.mrf.mxu0 }
 0x120   :  { %v245_v33 = vadd.f32 %v1466_v37, %v1441_v24 }
 0x121   :  { %v1468_v38 = vpop.f32.mrf.mxu0 }
 0x127   :  { %v1174_v31 = vpop.eup %1173 }
 0x128   :  { %v365_v32 = vpack.c.bf16 %v1174_v31, %v1174_v31  ;;  %v1171_v31 = vld [vmem:[#allocation9 + $0x8] sm:$0xff]  }
 0x12a   :  { %992 = vmatmul.mubr.bf16.vlgmr.msra.gmra.mxu0 %v365_v32  ;;  %v1172_v32 = vld [vmem:[#allocation9] sm:$0xff]  }
 0x12b   :  { %1016 = vmatpush3.bf16.msra.mxu0 %v1369_v2  ;;  %1031 = vmatprep.mubr.msk.bf16.mxu0 %vm1304_vm0, %v1303_v0 }
 0x12c   :  { %1017 = vmatprep.subr.bf16.mxu0 %v1303_v0 }
 0x12f   :  { %1018 = vmatpush3.bf16.msra.mxu0 %v1372_v4 }
 0x130   :  { %1019 = vmatprep.subr.bf16.mxu0 %v1303_v0 }
 0x133   :  { %1020 = vmatpush3.bf16.msra.mxu0 %v1376_v6 }
 0x134   :  { %1021 = vmatprep.subr.bf16.mxu0 %v1303_v0 }
 0x137   :  { %1022 = vmatpush3.bf16.msra.mxu0 %v1380_v8 }
 0x138   :  { %1023 = vmatprep.subr.bf16.mxu0 %v1303_v0 }
 0x13b   :  { %1024 = vmatpush3.bf16.msra.mxu0 %v1383_v10 }
 0x13c   :  { %1025 = vmatprep.subr.bf16.mxu0 %v1303_v0 }
 0x13f   :  { %1026 = vmatpush3.bf16.msra.mxu0 %v1387_v13 }
 0x140   :  { %1027 = vmatprep.subr.bf16.mxu0 %v1303_v0 }
 0x143   :  { %1028 = vmatpush3.bf16.msra.mxu0 %v1391_v15 }
 0x144   :  { %1029 = vmatprep.subr.bf16.mxu0 %v1303_v0 }
 0x147   :  { %1030 = vmatpush3.bf16.msra.mxu0 %v1396_v17 }
 0x148   :  { %1055 = vmatprep.subr.bf16.mxu0 %v1303_v0 }
 0x1ea   :  { %v400_v40 = vpop.f32.mrf.mxu0 }
 0x1eb   :  { %v406_v41 = vadd.f32 %v400_v40, %v221_v39 }
 0x1ec   :  { %v993_v42 = vpop.f32.mrf.mxu0 }
 0x1ed   :  { %1175 = vtanh.f32 %v406_v41  ;;  %v829_v42 = vld [vmem:[%s1572_s5] ss:$0 sm:$0xff] }
 0x1ee   :  { %v403_v43 = vpop.f32.mrf.mxu0 }
 0x1f0   :  { %v994_v44 = vpop.f32.mrf.mxu0 }
 0x1fa   :  { %v1176_v45 = vpop.eup %1175 }
 0x1fb   :  { %v410_v46 = vpack.c.bf16 %v1176_v45, %v1176_v45 }
 0x1fd   :  { %1012 = vmatmul.mubr.bf16.vlgmr.msra.gmra.mxu1 %v410_v46 }
 0x1fe   :  { %1036 = vmatpush3.bf16.msra.mxu1 %v1369_v2  ;;  %1051 = vmatprep.mubr.msk.bf16.mxu1 %vm1304_vm0, %v1303_v0 }
 0x1ff   :  { %1037 = vmatprep.subr.bf16.mxu1 %v1303_v0 }
 0x202   :  { %1038 = vmatpush3.bf16.msra.mxu1 %v1372_v4 }
 0x203   :  { %1039 = vmatprep.subr.bf16.mxu1 %v1303_v0 }
 0x206   :  { %1040 = vmatpush3.bf16.msra.mxu1 %v1376_v6 }
 0x207   :  { %1041 = vmatprep.subr.bf16.mxu1 %v1303_v0 }
 0x20a   :  { %1042 = vmatpush3.bf16.msra.mxu1 %v1380_v8 }
 0x20b   :  { %1043 = vmatprep.subr.bf16.mxu1 %v1303_v0 }
 0x20e   :  { %1044 = vmatpush3.bf16.msra.mxu1 %v1383_v10 }
 0x20f   :  { %1045 = vmatprep.subr.bf16.mxu1 %v1303_v0 }
 0x212   :  { %1046 = vmatpush3.bf16.msra.mxu1 %v1387_v13 }
 0x213   :  { %1047 = vmatprep.subr.bf16.mxu1 %v1303_v0 }
 0x216   :  { %1048 = vmatpush3.bf16.msra.mxu1 %v1391_v15 }
 0x217   :  { %1049 = vmatprep.subr.bf16.mxu1 %v1303_v0 }
 0x21a   :  { %1050 = vmatpush3.bf16.msra.mxu1 %v1396_v17 }
 0x21b   :  { %1075 = vmatprep.subr.bf16.mxu1 %v1303_v0 }
 0x2bd   :  { %v445_v48 = vpop.f32.mrf.mxu1 }
 0x2be   :  { %v451_v49 = vadd.f32 %v445_v48, %v226_v47 }
 0x2bf   :  { %v1013_v50 = vpop.f32.mrf.mxu1 }
 0x2c0   :  { %1177 = vtanh.f32 %v451_v49 }
 0x2c1   :  { %v448_v51 = vpop.f32.mrf.mxu1 }
 0x2c3   :  { %v1014_v52 = vpop.f32.mrf.mxu1 }
 0x2cd   :  { %v1178_v53 = vpop.eup %1177 }
 0x2ce   :  { %v455_v54 = vpack.c.bf16 %v1178_v53, %v1178_v53 }
 0x2d0   :  { %1032 = vmatmul.mubr.bf16.vlgmr.msra.gmra.mxu0 %v455_v54 }
 0x2d1   :  { %1056 = vmatpush3.bf16.msra.mxu0 %v1369_v2  ;;  %1071 = vmatprep.mubr.msk.bf16.mxu0 %vm1304_vm0, %v1303_v0 }
 0x2d2   :  { %1057 = vmatprep.subr.bf16.mxu0 %v1303_v0 }
 0x2d5   :  { %1058 = vmatpush3.bf16.msra.mxu0 %v1372_v4 }
 0x2d6   :  { %1059 = vmatprep.subr.bf16.mxu0 %v1303_v0 }
 0x2d9   :  { %1060 = vmatpush3.bf16.msra.mxu0 %v1376_v6 }
 0x2da   :  { %1061 = vmatprep.subr.bf16.mxu0 %v1303_v0 }
 0x2dd   :  { %1062 = vmatpush3.bf16.msra.mxu0 %v1380_v8 }
 0x2de   :  { %1063 = vmatprep.subr.bf16.mxu0 %v1303_v0 }
 0x2e1   :  { %1064 = vmatpush3.bf16.msra.mxu0 %v1383_v10 }
 0x2e2   :  { %1065 = vmatprep.subr.bf16.mxu0 %v1303_v0 }
 0x2e5   :  { %1066 = vmatpush3.bf16.msra.mxu0 %v1387_v13 }
 0x2e6   :  { %1067 = vmatprep.subr.bf16.mxu0 %v1303_v0 }
 0x2e9   :  { %1068 = vmatpush3.bf16.msra.mxu0 %v1391_v15 }
 0x2ea   :  { %1069 = vmatprep.subr.bf16.mxu0 %v1303_v0 }
 0x2ed   :  { %1070 = vmatpush3.bf16.msra.mxu0 %v1396_v17 }
 0x2ee   :  { %1095 = vmatprep.subr.bf16.mxu0 %v1303_v0 }
 0x390   :  { %v490_v56 = vpop.f32.mrf.mxu0 }
 0x391   :  { %v496_v57 = vadd.f32 %v490_v56, %v229_v55 }
 0x392   :  { %v1033_v58 = vpop.f32.mrf.mxu0 }
 0x393   :  { %1179 = vtanh.f32 %v496_v57 }
 0x394   :  { %v493_v59 = vpop.f32.mrf.mxu0 }
 0x396   :  { %v1034_v60 = vpop.f32.mrf.mxu0 }
 0x3a0   :  { %v1180_v61 = vpop.eup %1179 }
 0x3a1   :  { %v500_v62 = vpack.c.bf16 %v1180_v61, %v1180_v61 }
 0x3a3   :  { %1052 = vmatmul.mubr.bf16.vlgmr.msra.gmra.mxu1 %v500_v62 }
 0x3a4   :  { %1076 = vmatpush3.bf16.msra.mxu1 %v1369_v2  ;;  %1091 = vmatprep.mubr.msk.bf16.mxu1 %vm1304_vm0, %v1303_v0 }
 0x3a5   :  { %1077 = vmatprep.subr.bf16.mxu1 %v1303_v0 }
 0x3a8   :  { %1078 = vmatpush3.bf16.msra.mxu1 %v1372_v4 }
 0x3a9   :  { %1079 = vmatprep.subr.bf16.mxu1 %v1303_v0 }
 0x3ac   :  { %1080 = vmatpush3.bf16.msra.mxu1 %v1376_v6 }
 0x3ad   :  { %1081 = vmatprep.subr.bf16.mxu1 %v1303_v0 }
 0x3b0   :  { %1082 = vmatpush3.bf16.msra.mxu1 %v1380_v8 }
 0x3b1   :  { %1083 = vmatprep.subr.bf16.mxu1 %v1303_v0 }
 0x3b4   :  { %1084 = vmatpush3.bf16.msra.mxu1 %v1383_v10 }
 0x3b5   :  { %1085 = vmatprep.subr.bf16.mxu1 %v1303_v0 }
 0x3b8   :  { %1086 = vmatpush3.bf16.msra.mxu1 %v1387_v13 }
 0x3b9   :  { %1087 = vmatprep.subr.bf16.mxu1 %v1303_v0 }
 0x3bc   :  { %1088 = vmatpush3.bf16.msra.mxu1 %v1391_v15 }
 0x3bd   :  { %1089 = vmatprep.subr.bf16.mxu1 %v1303_v0 }
 0x3c0   :  { %1090 = vmatpush3.bf16.msra.mxu1 %v1396_v17 }
 0x3c1   :  { %1115 = vmatprep.subr.bf16.mxu1 %v1303_v0 }
 0x463   :  { %v535_v1 = vpop.f32.mrf.mxu1 }
 0x464   :  { %v541_v3 = vadd.f32 %v535_v1, %v234_v63 }
 0x465   :  { %v1053_v5 = vpop.f32.mrf.mxu1 }
 0x466   :  { %1181 = vtanh.f32 %v541_v3 }
 0x467   :  { %v538_v7 = vpop.f32.mrf.mxu1 }
 0x469   :  { %v1054_v9 = vpop.f32.mrf.mxu1 }
 0x473   :  { %v1182_v11 = vpop.eup %1181 }
 0x474   :  { %v545_v12 = vpack.c.bf16 %v1182_v11, %v1182_v11 }
 0x476   :  { %1072 = vmatmul.mubr.bf16.vlgmr.msra.gmra.mxu0 %v545_v12 }
 0x477   :  { %1096 = vmatpush3.bf16.msra.mxu0 %v1369_v2  ;;  %1111 = vmatprep.mubr.msk.bf16.mxu0 %vm1304_vm0, %v1303_v0  ;;  %v237_v2 = vadd.f32 %v1441_v24, %v1468_v38 }
 0x478   :  { %1097 = vmatprep.subr.bf16.mxu0 %v1303_v0 }
 0x47b   :  { %1098 = vmatpush3.bf16.msra.mxu0 %v1372_v4 }
 0x47c   :  { %1099 = vmatprep.subr.bf16.mxu0 %v1303_v0 }
 0x47f   :  { %1100 = vmatpush3.bf16.msra.mxu0 %v1376_v6 }
 0x480   :  { %1101 = vmatprep.subr.bf16.mxu0 %v1303_v0 }
 0x483   :  { %1102 = vmatpush3.bf16.msra.mxu0 %v1380_v8 }
 0x484   :  { %1103 = vmatprep.subr.bf16.mxu0 %v1303_v0 }
 0x487   :  { %1104 = vmatpush3.bf16.msra.mxu0 %v1383_v10 }
 0x488   :  { %1105 = vmatprep.subr.bf16.mxu0 %v1303_v0 }
 0x48b   :  { %1106 = vmatpush3.bf16.msra.mxu0 %v1387_v13  ;;  %v1165_v13 = vld [vmem:[#allocation9 + $0x38] sm:$0xff]  }
 0x48c   :  { %1107 = vmatprep.subr.bf16.mxu0 %v1303_v0 }
 0x48f   :  { %1108 = vmatpush3.bf16.msra.mxu0 %v1391_v15  ;;  %v1166_v15 = vld [vmem:[#allocation9 + $0x30] sm:$0xff]  }
 0x490   :  { %1109 = vmatprep.subr.bf16.mxu0 %v1303_v0 }
 0x493   :  { %1110 = vmatpush3.bf16.msra.mxu0 %v1396_v17  ;;  %v1167_v17 = vld [vmem:[#allocation9 + $0x28] sm:$0xff]  }
 0x536   :  { %v580_v4 = vpop.f32.mrf.mxu0 }
 0x537   :  { %v586_v6 = vadd.f32 %v580_v4, %v237_v2 }
 0x538   :  { %v1073_v8 = vpop.f32.mrf.mxu0 }
 0x539   :  { %1183 = vtanh.f32 %v586_v6 }
 0x53a   :  { %v583_v10 = vpop.f32.mrf.mxu0 }
 0x53c   :  { %v1074_v14 = vpop.f32.mrf.mxu0 }
 0x546   :  { %v1184_v16 = vpop.eup %1183 }
 0x547   :  { %v590_v18 = vpack.c.bf16 %v1184_v16, %v1184_v16 }
 0x549   :  { %1092 = vmatmul.mubr.bf16.vlgmr.msra.gmra.mxu1 %v590_v18 }
 0x54a   :  { %1131 = vmatprep.mubr.msk.bf16.mxu1 %vm1304_vm0, %v1303_v0  ;;  %1116 = vmatpush3.bf16.msra.mxu1 %v1165_v13 }
 0x54b   :  { %1117 = vmatprep.subr.bf16.mxu1 %v1303_v0 }
 0x54e   :  { %1118 = vmatpush3.bf16.msra.mxu1 %v1166_v15 }
 0x54f   :  { %1119 = vmatprep.subr.bf16.mxu1 %v1303_v0 }
 0x552   :  { %1120 = vmatpush3.bf16.msra.mxu1 %v1167_v17 }
 0x553   :  { %1121 = vmatprep.subr.bf16.mxu1 %v1303_v0 }
 0x556   :  { %1122 = vmatpush3.bf16.msra.mxu1 %v1168_v28 }
 0x557   :  { %1123 = vmatprep.subr.bf16.mxu1 %v1303_v0 }
 0x55a   :  { %1124 = vmatpush3.bf16.msra.mxu1 %v1169_v29 }
 0x55b   :  { %1125 = vmatprep.subr.bf16.mxu1 %v1303_v0 }
 0x55e   :  { %1126 = vmatpush3.bf16.msra.mxu1 %v1170_v30 }
 0x55f   :  { %1127 = vmatprep.subr.bf16.mxu1 %v1303_v0 }
 0x562   :  { %1128 = vmatpush3.bf16.msra.mxu1 %v1171_v31 }
 0x563   :  { %1129 = vmatprep.subr.bf16.mxu1 %v1303_v0 }
 0x566   :  { %1130 = vmatpush3.bf16.msra.mxu1 %v1172_v32 }
 0x609   :  { %v625_v20 = vpop.f32.mrf.mxu1 }
 0x60a   :  { %v631_v21 = vadd.f32 %v625_v20, %v242_v19 }
 0x60b   :  { %v1093_v22 = vpop.f32.mrf.mxu1 }
 0x60c   :  { %1185 = vtanh.f32 %v631_v21 }
 0x60d   :  { %v628_v23 = vpop.f32.mrf.mxu1 }
 0x60f   :  { %v1094_v25 = vpop.f32.mrf.mxu1 }
 0x619   :  { %v1186_v26 = vpop.eup %1185 }
 0x61a   :  { %v635_v27 = vpack.c.bf16 %v1186_v26, %v1186_v26 }
 0x61c   :  { %1112 = vmatmul.mubr.bf16.vlgmr.msra.gmra.mxu0 %v635_v27 }
 0x6dc   :  { %v670_v34 = vpop.f32.mrf.mxu0 }
 0x6dd   :  { %v676_v35 = vadd.f32 %v670_v34, %v245_v33 }
 0x6de   :  { %v1113_v36 = vpop.f32.mrf.mxu0 }
 0x6df   :  { %1187 = vtanh.f32 %v676_v35 }
 0x6e0   :  { %v673_v38 = vpop.f32.mrf.mxu0 }
 0x6e2   :  { %v1114_v39 = vpop.f32.mrf.mxu0 }
 0x6ec   :  { %v1188_v40 = vpop.eup %1187 }
 0x6ed   :  { %v678_v41 = vpack.c.bf16 %v1188_v40, %v1188_v40 }
 0x6ef   :  { %1132 = vmatmul.mubr.bf16.vlgmr.msra.gmra.mxu1 %v678_v41 }
 0x7af   :  { %v784_v0 = vpop.f32.mrf.mxu1 }
 0x7b0   :  { %v785_v43 = vadd.f32 %v829_v42, %v784_v0 }
 0x7b1   :  { %v1133_v44 = vpop.f32.mrf.mxu1 }
 0x7b2   :  { %790 = vst [vmem:[#allocation11] sm:$0xff] %v785_v43 }
 0x7b3   :  { %v787_v24 = vpop.f32.mrf.mxu1 }
 0x7b4   :  { %1280 = shalt.err (!%p1277_p10)
}
 0x7b5   :  { %800 = dma.vmem_to_hbm [thread:$0]  %s798_s19, 128, %s1573_s6, [#allocation5]   ;;  %v1134_v37 = vpop.f32.mrf.mxu1 }
 0x7b6   :  { %1295 = dma.done.wait [#allocation5], 128  }
 0x7b7   :  { %1296 = vsyncadd [#allocation5], 4294967168 }
 0x7b8   :  { %804 = vsyncpa [#allocation4], 1 }
 0x7b9   :  { %805 = vsyncpa [#allocation7], 1 }
 0x7ba   :  { %806 = vsyncpa [#allocation10], 1 }
 0x7bb   :  { %807 = vsyncpa [#allocation5], 1 }

</bundles_post_ra>
